<compile_context>
chip_gen: v5e
topology: v5e:2x2
jax: 0.10.0
libtpu: 0.0.40
codegen_flags: <defaults>
</compile_context>

<pallas_src>
import jax
import jax.numpy as jnp
from jax.experimental import pallas as pl
from jax.experimental.pallas import tpu as pltpu


def _round_up(x, m):
    return ((x + m - 1) // m) * m


def _head_kernel(x_ref, w1_ref, b1_ref, w2_ref, b2_ref, o_ref):
    # x:  [TB, input_dim]          (native dtype -> native MXU path)
    # w1: [input_dim, inner_dim]   b1: [1, inner_dim]
    # w2: [inner_dim, nc_pad]      b2: [1, nc_pad]
    # o:  [TB, nc_pad]             (nc_pad multiple of 128 -> lane-dense stores)
    h = jnp.dot(x_ref[...], w1_ref[...], preferred_element_type=jnp.float32)
    h = jnp.tanh(h + b1_ref[...].astype(jnp.float32))
    out = jnp.dot(h.astype(w2_ref.dtype), w2_ref[...],
                  preferred_element_type=jnp.float32)
    out = out + b2_ref[...].astype(jnp.float32)
    o_ref[...] = out.astype(o_ref.dtype)


def prepare_head_params(dense_w, dense_b, out_w, out_b):
    """One-time parameter prep (hoisted out of the per-call path).

    dense_w: [inner_dim, input_dim] (PyTorch [out, in]);  dense_b: [inner_dim]
    out_w:   [num_classes, inner_dim];                    out_b:  [num_classes]
    Transposes to [in, out] layout and zero-pads num_classes up to a multiple
    of 128 lanes.
    """
    inner_dim, _ = dense_w.shape
    num_classes = out_w.shape[0]
    nc_pad = _round_up(num_classes, 128)

    w1 = jnp.transpose(dense_w)                        # [input_dim, inner_dim]
    b1 = dense_b.reshape(1, inner_dim)                 # [1, inner_dim]
    w2 = jnp.zeros((inner_dim, nc_pad), out_w.dtype).at[:, :num_classes].set(
        jnp.transpose(out_w))                          # [inner_dim, nc_pad]
    b2 = jnp.zeros((1, nc_pad), out_b.dtype).at[:, :num_classes].set(
        out_b.reshape(1, num_classes))                 # [1, nc_pad]
    return {"w1": w1, "b1": b1, "w2": w2, "b2": b2, "num_classes": num_classes}


def _pick_tb(B, input_dim, nc_pad, itemsize):
    """Largest batch tile (multiple of the sublane packing) whose double-buffered
    input+output tiles fit comfortably under the v5e 16 MiB default scoped VMEM."""
    sublane = 8 if itemsize >= 4 else 16
    budget = 8 * 1024 * 1024                    # tile budget, leaves weight headroom
    per_row = 2 * itemsize * (input_dim + nc_pad)   # 2x = double-buffered in + out
    tb = max(sublane, (budget // max(per_row, 1)) // sublane * sublane)
    tb = min(tb, 512)                           # diminishing returns past ~512 rows
    tb = min(tb, _round_up(B, sublane))         # don't exceed the (padded) batch
    return int(tb)


def classification_head_forward(features, params):
    """features: [B, input_dim]; params from prepare_head_params()."""
    B, input_dim = features.shape
    w1, b1, w2, b2 = params["w1"], params["b1"], params["w2"], params["b2"]
    num_classes = params["num_classes"]
    inner_dim = w1.shape[1]
    nc_pad = w2.shape[1]

    tb = _pick_tb(B, input_dim, nc_pad, features.dtype.itemsize)
    b_pad = _round_up(B, tb)
    if b_pad != B:
        features = jnp.pad(features, ((0, b_pad - B), (0, 0)))

    out = pl.pallas_call(
        _head_kernel,
        out_shape=jax.ShapeDtypeStruct((b_pad, nc_pad), features.dtype),
        grid=(b_pad // tb,),
        in_specs=[
            # streamed batch tiles (re-DMA'd every grid step)
            pl.BlockSpec((tb, input_dim), lambda i: (i, 0)),
            # weights / biases: block index constant -> VMEM-resident across steps
            pl.BlockSpec((input_dim, inner_dim), lambda i: (0, 0)),
            pl.BlockSpec((1, inner_dim), lambda i: (0, 0)),
            pl.BlockSpec((inner_dim, nc_pad), lambda i: (0, 0)),
            pl.BlockSpec((1, nc_pad), lambda i: (0, 0)),
        ],
        out_specs=pl.BlockSpec((tb, nc_pad), lambda i: (i, 0)),
        compiler_params=pltpu.CompilerParams(
            dimension_semantics=("parallel",)),
    )(features, w1, b1, w2, b2)

    return out[:B, :num_classes]


def _linear_init(key, out_dim, in_dim):
    """Deterministic nn.Linear-style init: U(-1/sqrt(in), 1/sqrt(in))."""
    kw, kb = jax.random.split(key)
    bound = 1.0 / (in_dim ** 0.5)
    w = jax.random.uniform(kw, (out_dim, in_dim), jnp.float32, -bound, bound)
    b = jax.random.uniform(kb, (out_dim,), jnp.float32, -bound, bound)
    return w, b


if __name__ == "__main__":
    # Small correctness smoke test; production benchmarking should use
    # B in the thousands and input_dim/inner_dim ~ 768/1024.
    batch, input_dim, inner_dim, num_classes = 8, 32, 32, 8

    key = jax.random.PRNGKey(0)
    k_feat, k_dense, k_out = jax.random.split(key, 3)

    features = jax.random.normal(k_feat, (batch, input_dim), jnp.float32)
    dense_w, dense_b = _linear_init(k_dense, inner_dim, input_dim)
    out_w, out_b = _linear_init(k_out, num_classes, inner_dim)

    # One-time parameter prep (transpose + lane padding), done outside the call.
    params = prepare_head_params(dense_w, dense_b, out_w, out_b)

    out = classification_head_forward(features, params)
    out = jax.block_until_ready(out)

    # Reference check in plain JAX (same math, eval-mode dropout = identity).
    ref = jnp.tanh(features @ dense_w.T + dense_b) @ out_w.T + out_b
    assert out.shape == (batch, num_classes)
    assert jnp.allclose(out, ref, atol=1e-5, rtol=1e-5)

    print("KERNEL_OK")
</pallas_src>

<mosaic_0001>
module attributes {stable_mosaic.version = 11 : i64} {
  func.func @_head_kernel(%arg0: i32, %arg1: memref<8x32xf32, #tpu.memory_space<vmem>>, %arg2: memref<32x32xf32, #tpu.memory_space<vmem>>, %arg3: memref<1x32xf32, #tpu.memory_space<vmem>>, %arg4: memref<32x128xf32, #tpu.memory_space<vmem>>, %arg5: memref<1x128xf32, #tpu.memory_space<vmem>>, %arg6: memref<8x128xf32, #tpu.memory_space<vmem>>) attributes {dimension_semantics = [#tpu.dimension_semantics<parallel>], iteration_bounds = array<i64: 1>, scalar_prefetch = 0 : i64, scratch_operands = 0 : i64, tpu.core_type = #tpu.core_type<tc>, window_params = [{transform_indices = @transform_0, window_bounds = array<i64: 8, 32>}, {pipeline_mode = #tpu.pipeline_mode<synchronous>, transform_indices = @transform_1, window_bounds = array<i64: 32, 32>}, {pipeline_mode = #tpu.pipeline_mode<synchronous>, transform_indices = @transform_2, window_bounds = array<i64: 1, 32>}, {pipeline_mode = #tpu.pipeline_mode<synchronous>, transform_indices = @transform_3, window_bounds = array<i64: 32, 128>}, {pipeline_mode = #tpu.pipeline_mode<synchronous>, transform_indices = @transform_4, window_bounds = array<i64: 1, 128>}, {transform_indices = @transform_5, window_bounds = array<i64: 8, 128>}]} {
    %c0 = arith.constant 0 : index
    %c0_0 = arith.constant 0 : index
    %0 = vector.load %arg1[%c0, %c0_0] : memref<8x32xf32, #tpu.memory_space<vmem>>, vector<8x32xf32>
    %c0_1 = arith.constant 0 : index
    %c0_2 = arith.constant 0 : index
    %1 = vector.load %arg2[%c0_1, %c0_2] : memref<32x32xf32, #tpu.memory_space<vmem>>, vector<32x32xf32>
    %cst = arith.constant dense<0.000000e+00> : vector<8x32xf32>
    %2 = tpu.matmul %0, %1, %cst {dimension_numbers = #tpu.dot_dimension_numbers<[1], [0], [0], [1], [0, 0, 1, 1], [], []>} : vector<8x32xf32>, vector<32x32xf32>, vector<8x32xf32> -> vector<8x32xf32>
    %c0_3 = arith.constant 0 : index
    %c0_4 = arith.constant 0 : index
    %3 = vector.load %arg3[%c0_3, %c0_4] : memref<1x32xf32, #tpu.memory_space<vmem>>, vector<1x32xf32>
    %4 = vector.broadcast %3 : vector<1x32xf32> to vector<8x32xf32>
    %5 = arith.addf %2, %4 : vector<8x32xf32>
    %6 = math.tanh %5 : vector<8x32xf32>
    %c0_5 = arith.constant 0 : index
    %c0_6 = arith.constant 0 : index
    %7 = vector.load %arg4[%c0_5, %c0_6] : memref<32x128xf32, #tpu.memory_space<vmem>>, vector<32x128xf32>
    %cst_7 = arith.constant dense<0.000000e+00> : vector<8x128xf32>
    %8 = tpu.matmul %6, %7, %cst_7 {dimension_numbers = #tpu.dot_dimension_numbers<[1], [0], [0], [1], [0, 0, 1, 1], [], []>} : vector<8x32xf32>, vector<32x128xf32>, vector<8x128xf32> -> vector<8x128xf32>
    %c0_8 = arith.constant 0 : index
    %c0_9 = arith.constant 0 : index
    %9 = vector.load %arg5[%c0_8, %c0_9] : memref<1x128xf32, #tpu.memory_space<vmem>>, vector<1x128xf32>
    %10 = vector.broadcast %9 : vector<1x128xf32> to vector<8x128xf32>
    %11 = arith.addf %8, %10 : vector<8x128xf32>
    %c0_10 = arith.constant 0 : index
    %c0_11 = arith.constant 0 : index
    %12 = vector.load %arg6[%c0_10, %c0_11] : memref<8x128xf32, #tpu.memory_space<vmem>>, vector<8x128xf32>
    tpu.vector_store %arg6[%c0_10, %c0_11], %11 {strides = array<i32>} : memref<8x128xf32, #tpu.memory_space<vmem>>, vector<8x128xf32>,
    return
  }
  func.func @transform_0(%arg0: i32) -> (i32, i32) {
    %c0_i32 = arith.constant 0 : i32
    %c0_i32_0 = arith.constant 0 : i32
    return %arg0, %c0_i32 : i32, i32
  }
  func.func @transform_1(%arg0: i32) -> (i32, i32) {
    %c0_i32 = arith.constant 0 : i32
    %c0_i32_0 = arith.constant 0 : i32
    %c0_i32_1 = arith.constant 0 : i32
    return %c0_i32, %c0_i32_0 : i32, i32
  }
  func.func @transform_2(%arg0: i32) -> (i32, i32) {
    %c0_i32 = arith.constant 0 : i32
    %c0_i32_0 = arith.constant 0 : i32
    %c0_i32_1 = arith.constant 0 : i32
    return %c0_i32, %c0_i32_0 : i32, i32
  }
  func.func @transform_3(%arg0: i32) -> (i32, i32) {
    %c0_i32 = arith.constant 0 : i32
    %c0_i32_0 = arith.constant 0 : i32
    %c0_i32_1 = arith.constant 0 : i32
    return %c0_i32, %c0_i32_0 : i32, i32
  }
  func.func @transform_4(%arg0: i32) -> (i32, i32) {
    %c0_i32 = arith.constant 0 : i32
    %c0_i32_0 = arith.constant 0 : i32
    %c0_i32_1 = arith.constant 0 : i32
    return %c0_i32, %c0_i32_0 : i32, i32
  }
  func.func @transform_5(%arg0: i32) -> (i32, i32) {
    %c0_i32 = arith.constant 0 : i32
    %c0_i32_0 = arith.constant 0 : i32
    return %arg0, %c0_i32 : i32, i32
  }
}

</mosaic_0001>

<bundles_post_ra>
// kernel: tpu_custom_call.1
= control target key start
LH: loop header
LB: loop body
LE: loop exit
PB: predicated region body
PF: predicated region fallthrough
CT: control target
= control target key end

     0   :  { %10 = vsyncpa [#allocation3], 0  ;;  %s320_s0 = inlined_call_operand.hbm [shape: f32[8,32], index: 0, kind: input, shape index: {}]   ;;  %s321_s1 = inlined_call_operand.hbm [shape: f32[32,32], index: 1, kind: input, shape index: {}]   ;;  %s322_s2 = inlined_call_operand.vmem [shape: f32[1,32], index: 2, kind: input, shape index: {}]   ;;  %s323_s3 = inlined_call_operand.hbm [shape: f32[32,128], index: 3, kind: input, shape index: {}]   ;;  %s324_s4 = inlined_call_operand.vmem [shape: f32[1,128], index: 4, kind: input, shape index: {}]   ;;  %s325_s5 = inlined_call_operand.hbm [shape: f32[8,128], index: 5, kind: output, shape index: {}]  }
   0x1   :  { %11 = vsyncpa [#allocation6], 0  ;;  %s28_s20 = sshll.u32 %s321_s1, 4  ;;  %s29_s20 = int_to_ptr.hbm [resolvable:$true] %s28_s20 }
   0x2   :  { %12 = vsyncpa [#allocation4], 0  ;;  %s264_s21 = smov [#allocation5]   ;;  %s18_s25 = sshll.u32 %s320_s0, 4  ;;  %s19_s25 = int_to_ptr.hbm [resolvable:$true] %s18_s25 }
   0x3   :  { %s30_s22 = sshll.u32 %s264_s21, 4  ;;  %s265_s26 = smov 128   ;;  %s31_s22 = int_to_ptr.vmem [resolvable:$true] %s30_s22 }
   0x4   :  { %s266_s27 = smov 8   ;;  %s267_s28 = smov [#allocation2]  }
   0x5   :  { %36 = dma.hbm_to_vmem [thread:$0]  %s29_s20, 512, %s31_s22, [#allocation6], %s265_s26, %s265_s26, %s266_s27  }
   0x6   :  { %s20_s29 = sshll.u32 %s267_s28, 4  ;;  %s43_s7 = sshll.u32 %s323_s3, 4  ;;  %s21_s29 = int_to_ptr.vmem [resolvable:$true] %s20_s29  ;;  %s44_s7 = int_to_ptr.hbm [resolvable:$true] %s43_s7 }
   0x7   :  { %23 = dma.hbm_to_vmem [thread:$0]  %s19_s25, 128, %s21_s29, [#allocation3]  }
   0x8   :  { %s268_s1 = smov [#allocation7]  }
   0x9   :  { %s45_s8 = sshll.u32 %s268_s1, 4  ;;  %s46_s8 = int_to_ptr.vmem [resolvable:$true] %s45_s8 }
   0xa   :  { %51 = dma.hbm_to_vmem [thread:$0]  %s44_s7, 512, %s46_s8, [#allocation6], %s265_s26, %s265_s26, %s266_s27  }
   0xb   :  { %258 = dma.done.wait [#allocation3], 128  }
   0xc   :  { %259 = vsyncadd [#allocation3], 4294967168 }
   0xd   :  { %260 = dma.done.wait [#allocation6], 1024  }
   0xe   :  { %261 = vsyncadd [#allocation6], 4294966272  ;;  %v70_v0 = vld [vmem:[#allocation5 + $0x18] sm:$0xff]  ;;  %v69_v1 = vld [vmem:[#allocation5 + $0x10] sm:$0xff]  ;;  %vm75_vm0 = vcmask 261120   ;;  %s269_s11 = smov [#allocation8]  }
   0xf   :  { %91 = vmatpush.msra.mxu0 %v70_v0  ;;  %v68_v2 = vld [vmem:[#allocation5 + $0x8] sm:$0xff]  ;;  %v67_v3 = vld [vmem:[#allocation5] sm:$0xff]  ;;  %v66_v4 = vld [vmem:[#allocation2] sm:$0xff]  ;;  %s137_s12 = sshll.u32 %s269_s11, 4  ;;  %s139_s15 = sshll.u32 %s325_s5, 4  ;;  %s138_s12 = int_to_ptr.vmem [resolvable:$true] %s137_s12  ;;  %s140_s15 = int_to_ptr.hbm [resolvable:$true] %s139_s15 }
  0x10   :  { %v103_v5 = vld [vmem:[#allocation7 + $0x18] sm:$0xff]  ;;  %v102_v6 = vld [vmem:[#allocation7 + $0x10] sm:$0xff]  ;;  %v101_v7 = vld [vmem:[#allocation7 + $0x8] sm:$0xff] }
  0x11   :  { %92 = vmatpush.msra.mxu0 %v69_v1  ;;  %123 = vmatpush.msra.mxu1 %v103_v5  ;;  %v100_v8 = vld [vmem:[#allocation7] sm:$0xff]  ;;  %v158_v9 = vld [vmem:[%s322_s2] ss:$0 sm:$0xff] }
  0x12   :  { %v159_v13 = vld [vmem:[%s324_s4] ss:$0 sm:$0xff] }
  0x13   :  { %93 = vmatpush.msra.mxu0 %v68_v2  ;;  %124 = vmatpush.msra.mxu1 %v102_v6 }
  0x15   :  { %94 = vmatpush.msra.mxu0 %v67_v3  ;;  %125 = vmatpush.msra.mxu1 %v101_v7 }
  0x16   :  { %150 = vmatmul.msk.f32.vlgmr.msra.gmra.mxu0 %vm75_vm0, %v66_v4 }
  0x17   :  { %126 = vmatpush.msra.mxu1 %v100_v8 }
  0x93   :  { %v96_v10 = vpop.f32.mrf.mxu0 }
  0x94   :  { %v97_v11 = vadd.f32 %v158_v9, %v96_v10 }
  0x96   :  { %160 = vtanh.f32 %v97_v11 }
  0x9c   :  { %v161_v12 = vpop.eup %160 }
  0x9d   :  { %151 = vmatmul.msk.f32.vlgmr.msra.gmra.mxu1 %vm75_vm0, %v161_v12 }
 0x11a   :  { %v128_v14 = vpop.f32.mrf.mxu1 }
 0x11b   :  { %v129_v15 = vadd.f32 %v159_v13, %v128_v14 }
 0x11d   :  { %131 = vst [vmem:[#allocation8] sm:$0xff] %v129_v15 }
 0x11e   :  { %142 = dma.vmem_to_hbm [thread:$0]  %s138_s12, 128, %s140_s15, [#allocation4]  }
 0x11f   :  { %262 = dma.done.wait [#allocation4], 128  }
 0x120   :  { %263 = vsyncadd [#allocation4], 4294967168 }
 0x121   :  { %147 = vsyncpa [#allocation3], 1 }
 0x122   :  { %148 = vsyncpa [#allocation6], 1 }
 0x123   :  { %149 = vsyncpa [#allocation4], 1 }

</bundles_post_ra>
